<compile_context>
chip_gen: v6e
topology: v6e:2x2x1
jax: 0.10.0
libtpu: 0.0.40
codegen_flags: <defaults>
</compile_context>

<pallas_src>
import math

import jax
import jax.numpy as jnp
from jax.experimental import pallas as pl
from jax.experimental.pallas import tpu as pltpu


def _round_up(a, b):
    return ((a + b - 1) // b) * b


def _vmem_capacity_bytes():
    try:
        info = pltpu.get_tpu_info()
        cap = getattr(info, "vmem_capacity_bytes", None)
        if cap:
            return int(cap)
    except Exception:
        pass
    return 64 * 1024 * 1024  # conservative fallback (v7x per-TC VMEM)


# ----------------------------- kernels --------------------------------------


def _hidden_act(x_ref, w1_ref, b1_ref, alpha_ref, mm_dtype):
    """h = PReLU(x @ W1 + b1), f32 throughout (bias add / activation)."""
    def cast(v):
        return v if mm_dtype is None else v.astype(mm_dtype)

    h = jnp.dot(cast(x_ref[...]), cast(w1_ref[...]),
                preferred_element_type=jnp.float32)
    h = h + b1_ref[...].astype(jnp.float32)
    alpha = alpha_ref[0].astype(jnp.float32)     # scalar read from SMEM
    h = jnp.where(h > 0.0, h, alpha * h)
    # Dropout: identity (eval / inference mode).
    # TODO(synk): training-mode dropout (stochastic masking) not implemented.
    return h


def _make_single_chunk_kernel(mm_dtype):
    """Whole hidden dim resident: no accumulator scratch, weights DMA'd once."""
    def kernel(x_ref, w1_ref, b1_ref, alpha_ref, w2_ref, b2_ref, o_ref):
        h = _hidden_act(x_ref, w1_ref, b1_ref, alpha_ref, mm_dtype)
        h = h.astype(mm_dtype if mm_dtype is not None else w2_ref.dtype)
        out = jnp.dot(h, w2_ref[...], preferred_element_type=jnp.float32)
        o_ref[...] = (out + b2_ref[...].astype(jnp.float32)).astype(o_ref.dtype)
    return kernel


def _make_chunked_kernel(mm_dtype):
    """Hidden dim streamed in chunks; f32 accumulator scratch across chunks."""
    def kernel(x_ref, w1_ref, b1_ref, alpha_ref, w2_ref, b2_ref, o_ref, acc_ref):
        hk = pl.program_id(1)
        h = _hidden_act(x_ref, w1_ref, b1_ref, alpha_ref, mm_dtype)
        h = h.astype(mm_dtype if mm_dtype is not None else w2_ref.dtype)
        partial = jnp.dot(h, w2_ref[...], preferred_element_type=jnp.float32)

        # First chunk overwrites (no zero-fill + read-modify-write) ...
        @pl.when(hk == 0)
        def _():
            acc_ref[...] = partial

        # ... later chunks accumulate.
        @pl.when(hk > 0)
        def _():
            acc_ref[...] += partial

        @pl.when(hk == pl.num_programs(1) - 1)
        def _():
            o_ref[...] = (acc_ref[...] + b2_ref[...].astype(jnp.float32)
                          ).astype(o_ref.dtype)
    return kernel


# --------------------------- tiling selection --------------------------------


def _pick_config(m, d_pad, hidden, x_bytes, w_bytes, o_bytes,
                 tm_req, hc_req, weight_buffers, budget, force_chunked):
    """Choose (row tile, hidden chunk, padded hidden, #chunks, weight buffers)."""
    m16 = max(16, _round_up(m, 16))
    h128 = _round_up(hidden, 128)

    def cap_tm(t):
        return max(16, min(_round_up(t, 16), m16))

    def footprint(tm, hc, wbuf, chunked):
        f = 2 * tm * d_pad * x_bytes                       # dbl-buffered x tile
        f += 2 * tm * d_pad * o_bytes                      # dbl-buffered out tile
        f += wbuf * (d_pad * hc + hc * d_pad) * w_bytes    # W1 + W2 chunk(s)
        f += wbuf * 8 * _round_up(hc, 128) * w_bytes       # b1 chunk (padded)
        f += 8 * d_pad * w_bytes                           # b2
        f += tm * hc * 4                                   # f32 hidden temp
        if chunked:
            f += tm * d_pad * 4                            # f32 accumulator
        return f

    # Preferred path: whole hidden dim resident as a single chunk.
    if not force_chunked:
        for t in sorted({cap_tm(tm_req), cap_tm(512), cap_tm(256), cap_tm(128)},
                        reverse=True):
            if footprint(t, h128, 1, False) <= budget:
                return dict(tm=t, hc=h128, h_pad=h128, n_hc=1, wbuf=1)

    # Fallback: stream the hidden dim in chunks (re-streams weights per row
    # tile -> use the largest row tile that fits to amortize weight traffic).
    hc_req = max(128, _round_up(hc_req, 128))
    tm_cands = sorted({cap_tm(max(tm_req, 512)), cap_tm(512), cap_tm(384),
                       cap_tm(256), cap_tm(128)}, reverse=True)
    hc_cands = sorted({c for c in (hc_req, 512, 384, 256, 128)
                       if c <= hc_req and c <= h128 and c % 128 == 0},
                      reverse=True)
    if not hc_cands:
        hc_cands = [min(128, h128)]
    wbuf_cands = sorted({max(2, weight_buffers), 2}, reverse=True)
    for t in tm_cands:
        for hc in hc_cands:
            for wbuf in wbuf_cands:
                if footprint(t, hc, wbuf, True) <= budget:
                    h_pad = _round_up(hidden, hc)
                    return dict(tm=t, hc=hc, h_pad=h_pad,
                                n_hc=h_pad // hc, wbuf=wbuf)

    # Last resort: smallest tiles (let the compiler arbitrate).
    hc = min(128, h128)
    h_pad = _round_up(hidden, hc)
    return dict(tm=cap_tm(128), hc=hc, h_pad=h_pad, n_hc=h_pad // hc, wbuf=2)


# ------------------------------- wrapper --------------------------------------


def pffn_forward(x, w1, b1, alpha, w2, b2, *, tm=256, hc=512,
                 mxu_dtype=None, weight_buffers=2,
                 vmem_limit_bytes=None, force_chunked=False):
    """Position-wise FFN: Linear -> PReLU -> (dropout: identity) -> Linear.

    x: (..., d_total); w1: (d_total, hidden) pre-transposed; w2: (hidden, d_total).

    Auto-sizing keeps the whole hidden dim resident in VMEM (weights DMA'd
    once) whenever the footprint fits ~0.8 * vmem_limit; otherwise it streams
    hidden-dim chunks (multiples of 128, hidden zero-padded to the chunk) with
    a larger row tile.  d_total is padded to a multiple of 128 for lane-dense
    stores.  `mxu_dtype=jnp.bfloat16` opts f32 params into bf16 MXU matmuls
    (f32 accumulation / bias / PReLU kept).
    """
    d_total = x.shape[-1]
    hidden = w1.shape[1]
    assert w1.shape[0] == d_total and w2.shape == (hidden, d_total)

    lead_shape = x.shape[:-1]
    x2d = x.reshape(-1, d_total)
    m = x2d.shape[0]

    out_dtype = x.dtype
    x_bytes = x2d.dtype.itemsize
    w_bytes = w1.dtype.itemsize
    o_bytes = jnp.dtype(out_dtype).itemsize

    if vmem_limit_bytes is None:
        vmem_limit_bytes = int(0.75 * _vmem_capacity_bytes())
    budget = int(0.80 * vmem_limit_bytes)  # headroom for compiler-internal scratch

    d_pad = _round_up(d_total, 128)  # lane-dense output stores

    cfg = _pick_config(m, d_pad, hidden, x_bytes, w_bytes, o_bytes,
                       tm, hc, weight_buffers, budget, force_chunked)
    tm_eff, hc_eff = cfg["tm"], cfg["hc"]
    h_pad, n_hc, wbuf = cfg["h_pad"], cfg["n_hc"], cfg["wbuf"]

    m_pad = _round_up(m, tm_eff)
    n_rows = m_pad // tm_eff

    # Zero padding is exact: padded x columns / W rows contribute nothing, and
    # padded hidden columns have zero bias -> PReLU(0) = 0 -> zero W2 rows.
    if m_pad != m or d_pad != d_total:
        x2d = jnp.pad(x2d, ((0, m_pad - m), (0, d_pad - d_total)))
    w1_p = jnp.pad(w1, ((0, d_pad - d_total), (0, h_pad - hidden)))
    b1_p = jnp.pad(b1.reshape(1, hidden), ((0, 0), (0, h_pad - hidden)))
    w2_p = jnp.pad(w2, ((0, h_pad - hidden), (0, d_pad - d_total)))
    b2_p = jnp.pad(b2.reshape(1, d_total), ((0, 0), (0, d_pad - d_total)))
    alpha_1d = jnp.asarray(alpha, dtype=jnp.float32).reshape(1)

    # Actual HBM traffic: weights are re-streamed per row tile when chunked.
    weight_stream = n_rows if n_hc > 1 else 1
    cost = pl.CostEstimate(
        flops=4 * m_pad * d_pad * h_pad,
        transcendentals=0,
        bytes_accessed=(x2d.size * x_bytes
                        + m_pad * d_pad * o_bytes
                        + weight_stream * (w1_p.size + w2_p.size) * w_bytes
                        + (b1_p.size + b2_p.size) * w_bytes),
    )

    smem_spec = pl.BlockSpec(memory_space=pltpu.MemorySpace.SMEM)

    if n_hc == 1:
        kernel = _make_single_chunk_kernel(mxu_dtype)
        grid = (n_rows,)
        in_specs = [
            pl.BlockSpec((tm_eff, d_pad), lambda i: (i, 0)),                 # x
            pl.BlockSpec((d_pad, h_pad), lambda i: (0, 0),
                         pipeline_mode=pl.Buffered(1)),                      # W1
            pl.BlockSpec((1, h_pad), lambda i: (0, 0),
                         pipeline_mode=pl.Buffered(1)),                      # b1
            smem_spec,                                                       # alpha
            pl.BlockSpec((h_pad, d_pad), lambda i: (0, 0),
                         pipeline_mode=pl.Buffered(1)),                      # W2
            pl.BlockSpec((1, d_pad), lambda i: (0, 0),
                         pipeline_mode=pl.Buffered(1)),                      # b2
        ]
        out_specs = pl.BlockSpec((tm_eff, d_pad), lambda i: (i, 0))
        scratch_shapes = []
        dim_sem = ("parallel",)
    else:
        kernel = _make_chunked_kernel(mxu_dtype)
        grid = (n_rows, n_hc)  # reduction (hidden) axis innermost
        in_specs = [
            pl.BlockSpec((tm_eff, d_pad), lambda i, k: (i, 0)),              # x
            pl.BlockSpec((d_pad, hc_eff), lambda i, k: (0, k),
                         pipeline_mode=pl.Buffered(wbuf)),                   # W1 chunk
            pl.BlockSpec((1, hc_eff), lambda i, k: (0, k),
                         pipeline_mode=pl.Buffered(wbuf)),                   # b1 chunk
            smem_spec,                                                       # alpha
            pl.BlockSpec((hc_eff, d_pad), lambda i, k: (k, 0),
                         pipeline_mode=pl.Buffered(wbuf)),                   # W2 chunk
            pl.BlockSpec((1, d_pad), lambda i, k: (0, 0),
                         pipeline_mode=pl.Buffered(1)),                      # b2
        ]
        out_specs = pl.BlockSpec((tm_eff, d_pad), lambda i, k: (i, 0))
        scratch_shapes = [pltpu.VMEM((tm_eff, d_pad), jnp.float32)]
        dim_sem = ("parallel", "arbitrary")

    out2d = pl.pallas_call(
        kernel,
        out_shape=jax.ShapeDtypeStruct((m_pad, d_pad), out_dtype),
        grid_spec=pltpu.PrefetchScalarGridSpec(
            num_scalar_prefetch=0,
            grid=grid,
            in_specs=in_specs,
            out_specs=out_specs,
            scratch_shapes=scratch_shapes,
        ),
        compiler_params=pltpu.CompilerParams(
            dimension_semantics=dim_sem,
            vmem_limit_bytes=vmem_limit_bytes,
        ),
        cost_estimate=cost,
    )(x2d, w1_p, b1_p, alpha_1d, w2_p, b2_p)

    out2d = out2d[:m, :d_total]
    return out2d.reshape(*lead_shape, d_total)


# ------------------------------ reference -------------------------------------


def init_params(key, d_total, hidden_dim, dtype=jnp.float32):
    """Deterministic init mimicking nn.Linear defaults (U(-1/sqrt(fan_in), ...))."""
    k1, k2, k3, k4 = jax.random.split(key, 4)
    bound1 = 1.0 / math.sqrt(d_total)
    bound2 = 1.0 / math.sqrt(hidden_dim)
    # Stored pre-transposed: (in_features, out_features).
    w1 = jax.random.uniform(k1, (d_total, hidden_dim), dtype, -bound1, bound1)
    b1 = jax.random.uniform(k2, (hidden_dim,), dtype, -bound1, bound1)
    w2 = jax.random.uniform(k3, (hidden_dim, d_total), dtype, -bound2, bound2)
    b2 = jax.random.uniform(k4, (d_total,), dtype, -bound2, bound2)
    alpha = jnp.asarray(0.25, dtype)  # nn.PReLU default init
    return w1, b1, alpha, w2, b2


def reference_forward(x, w1, b1, alpha, w2, b2):
    h = x @ w1 + b1
    h = jnp.where(h > 0, h, alpha * h)
    return h @ w2 + b2


if __name__ == "__main__":
    batch, seq, d_total, hidden_dim = 2, 8, 32, 64
    key = jax.random.PRNGKey(0)
    kx, kp = jax.random.split(key)

    x = jax.random.normal(kx, (batch, seq, d_total), dtype=jnp.float32)
    w1, b1, alpha, w2, b2 = init_params(kp, d_total, hidden_dim)

    # --- f32, preferred single-resident-chunk path ------------------------
    out = jax.block_until_ready(pffn_forward(x, w1, b1, alpha, w2, b2))
    ref = reference_forward(x.reshape(-1, d_total), w1, b1, alpha, w2, b2)
    ref = ref.reshape(batch, seq, d_total)
    assert out.shape == (batch, seq, d_total)
    assert jnp.allclose(out, ref, atol=1e-5, rtol=1e-5), "f32 mismatch vs reference"

    # --- ragged rows + forced hidden-chunked path (accumulator kernel) ----
    hidden_big = 256
    w1b, b1b, alphab, w2b, b2b = init_params(kp, d_total, hidden_big)
    x_r = jax.random.normal(kx, (3, 5, d_total), dtype=jnp.float32)
    out_r = jax.block_until_ready(
        pffn_forward(x_r, w1b, b1b, alphab, w2b, b2b, hc=128, force_chunked=True))
    ref_r = reference_forward(x_r.reshape(-1, d_total), w1b, b1b, alphab, w2b, b2b)
    ref_r = ref_r.reshape(3, 5, d_total)
    assert jnp.allclose(out_r, ref_r, atol=1e-5, rtol=1e-5), "chunked mismatch"

    # --- bf16 params / activations (bf16 MXU, f32 accumulate) -------------
    bf = jnp.bfloat16
    out_bf = jax.block_until_ready(
        pffn_forward(x.astype(bf), w1.astype(bf), b1.astype(bf), alpha,
                     w2.astype(bf), b2.astype(bf)))
    assert out_bf.dtype == bf
    assert jnp.allclose(out_bf.astype(jnp.float32), ref, atol=1e-1, rtol=1e-1), \
        "bf16 mismatch vs reference"

    # --- opt-in bf16 MXU path for f32 params -------------------------------
    out_mx = jax.block_until_ready(
        pffn_forward(x, w1, b1, alpha, w2, b2, mxu_dtype=jnp.bfloat16))
    assert jnp.allclose(out_mx, ref, atol=5e-2, rtol=5e-2), "mxu_dtype mismatch"

    print("KERNEL_OK")
</pallas_src>

<mosaic_0001>
module attributes {stable_mosaic.version = 11 : i64} {
  func.func @kernel(%arg0: i32, %arg1: memref<16x128xf32, #tpu.memory_space<vmem>>, %arg2: memref<128x128xf32, #tpu.memory_space<vmem>>, %arg3: memref<1x128xf32, #tpu.memory_space<vmem>>, %arg4: memref<1xf32, #tpu.memory_space<smem>>, %arg5: memref<128x128xf32, #tpu.memory_space<vmem>>, %arg6: memref<1x128xf32, #tpu.memory_space<vmem>>, %arg7: memref<16x128xf32, #tpu.memory_space<vmem>>) attributes {dimension_semantics = [#tpu.dimension_semantics<parallel>], iteration_bounds = array<i64: 1>, scalar_prefetch = 0 : i64, scratch_operands = 0 : i64, tpu.core_type = #tpu.core_type<tc>, window_params = [{transform_indices = @transform_0, window_bounds = array<i64: 16, 128>}, {pipeline_mode = #tpu.pipeline_mode<synchronous>, transform_indices = @transform_1, window_bounds = array<i64: 128, 128>}, {pipeline_mode = #tpu.pipeline_mode<synchronous>, transform_indices = @transform_2, window_bounds = array<i64: 1, 128>}, {transform_indices = @transform_3, window_bounds = array<i64: 1>}, {pipeline_mode = #tpu.pipeline_mode<synchronous>, transform_indices = @transform_4, window_bounds = array<i64: 128, 128>}, {pipeline_mode = #tpu.pipeline_mode<synchronous>, transform_indices = @transform_5, window_bounds = array<i64: 1, 128>}, {transform_indices = @transform_6, window_bounds = array<i64: 16, 128>}]} {
    %c0 = arith.constant 0 : index
    %c0_0 = arith.constant 0 : index
    %0 = vector.load %arg1[%c0, %c0_0] : memref<16x128xf32, #tpu.memory_space<vmem>>, vector<16x128xf32>
    %c0_1 = arith.constant 0 : index
    %c0_2 = arith.constant 0 : index
    %1 = vector.load %arg2[%c0_1, %c0_2] : memref<128x128xf32, #tpu.memory_space<vmem>>, vector<128x128xf32>
    %cst = arith.constant dense<0.000000e+00> : vector<16x128xf32>
    %2 = tpu.matmul %0, %1, %cst {dimension_numbers = #tpu.dot_dimension_numbers<[1], [0], [0], [1], [0, 0, 1, 1], [], []>} : vector<16x128xf32>, vector<128x128xf32>, vector<16x128xf32> -> vector<16x128xf32>
    %c0_3 = arith.constant 0 : index
    %c0_4 = arith.constant 0 : index
    %3 = vector.load %arg3[%c0_3, %c0_4] : memref<1x128xf32, #tpu.memory_space<vmem>>, vector<1x128xf32>
    %4 = vector.broadcast %3 : vector<1x128xf32> to vector<16x128xf32>
    %5 = arith.addf %2, %4 : vector<16x128xf32>
    %c0_5 = arith.constant 0 : index
    %6 = memref.load %arg4[%c0_5] : memref<1xf32, #tpu.memory_space<smem>>
    %cst_6 = arith.constant 0.000000e+00 : f32
    %7 = vector.broadcast %cst_6 : f32 to vector<16x128xf32>
    %8 = arith.cmpf ogt, %5, %7 : vector<16x128xf32>
    %9 = vector.broadcast %6 : f32 to vector<16x128xf32>
    %10 = arith.mulf %9, %5 : vector<16x128xf32>
    %11 = arith.select %8, %5, %10 : vector<16x128xi1>, vector<16x128xf32>
    %c0_7 = arith.constant 0 : index
    %c0_8 = arith.constant 0 : index
    %12 = vector.load %arg5[%c0_7, %c0_8] : memref<128x128xf32, #tpu.memory_space<vmem>>, vector<128x128xf32>
    %cst_9 = arith.constant dense<0.000000e+00> : vector<16x128xf32>
    %13 = tpu.matmul %11, %12, %cst_9 {dimension_numbers = #tpu.dot_dimension_numbers<[1], [0], [0], [1], [0, 0, 1, 1], [], []>} : vector<16x128xf32>, vector<128x128xf32>, vector<16x128xf32> -> vector<16x128xf32>
    %c0_10 = arith.constant 0 : index
    %c0_11 = arith.constant 0 : index
    %14 = vector.load %arg6[%c0_10, %c0_11] : memref<1x128xf32, #tpu.memory_space<vmem>>, vector<1x128xf32>
    %15 = vector.broadcast %14 : vector<1x128xf32> to vector<16x128xf32>
    %16 = arith.addf %13, %15 : vector<16x128xf32>
    %c0_12 = arith.constant 0 : index
    %c0_13 = arith.constant 0 : index
    %17 = vector.load %arg7[%c0_12, %c0_13] : memref<16x128xf32, #tpu.memory_space<vmem>>, vector<16x128xf32>
    tpu.vector_store %arg7[%c0_12, %c0_13], %16 {strides = array<i32>} : memref<16x128xf32, #tpu.memory_space<vmem>>, vector<16x128xf32>,
    return
  }
  func.func @transform_0(%arg0: i32) -> (i32, i32) {
    %c0_i32 = arith.constant 0 : i32
    %c0_i32_0 = arith.constant 0 : i32
    return %arg0, %c0_i32 : i32, i32
  }
  func.func @transform_1(%arg0: i32) -> (i32, i32) {
    %c0_i32 = arith.constant 0 : i32
    %c0_i32_0 = arith.constant 0 : i32
    %c0_i32_1 = arith.constant 0 : i32
    return %c0_i32, %c0_i32_0 : i32, i32
  }
  func.func @transform_2(%arg0: i32) -> (i32, i32) {
    %c0_i32 = arith.constant 0 : i32
    %c0_i32_0 = arith.constant 0 : i32
    %c0_i32_1 = arith.constant 0 : i32
    return %c0_i32, %c0_i32_0 : i32, i32
  }
  func.func @transform_3(%arg0: i32) -> i32 {
    %c0_i32 = arith.constant 0 : i32
    %c0_i32_0 = arith.constant 0 : i32
    return %c0_i32 : i32
  }
  func.func @transform_4(%arg0: i32) -> (i32, i32) {
    %c0_i32 = arith.constant 0 : i32
    %c0_i32_0 = arith.constant 0 : i32
    %c0_i32_1 = arith.constant 0 : i32
    return %c0_i32, %c0_i32_0 : i32, i32
  }
  func.func @transform_5(%arg0: i32) -> (i32, i32) {
    %c0_i32 = arith.constant 0 : i32
    %c0_i32_0 = arith.constant 0 : i32
    %c0_i32_1 = arith.constant 0 : i32
    return %c0_i32, %c0_i32_0 : i32, i32
  }
  func.func @transform_6(%arg0: i32) -> (i32, i32) {
    %c0_i32 = arith.constant 0 : i32
    %c0_i32_0 = arith.constant 0 : i32
    return %arg0, %c0_i32 : i32, i32
  }
}

</mosaic_0001>

<bundles_post_ra>
// kernel: tpu_custom_call.1
= control target key start
LH: loop header
LB: loop body
LE: loop exit
PB: predicated region body
PF: predicated region fallthrough
CT: control target
= control target key end

     0   :  { %12 = vsyncpa [#allocation4], 0  ;;  %s566_s0 = inlined_call_operand.hbm [shape: f32[16,128], index: 0, kind: input, shape index: {}]   ;;  %s567_s1 = inlined_call_operand.hbm [shape: f32[128,128], index: 1, kind: input, shape index: {}]   ;;  %s568_s2 = inlined_call_operand.vmem [shape: f32[1,128], index: 2, kind: input, shape index: {}]   ;;  %s569_s3 = inlined_call_operand.<no memory space> [shape: f32[1], index: 3, kind: input, shape index: {}]   ;;  %s570_s4 = inlined_call_operand.hbm [shape: f32[128,128], index: 4, kind: input, shape index: {}]   ;;  %s571_s5 = inlined_call_operand.vmem [shape: f32[1,128], index: 5, kind: input, shape index: {}]   ;;  %s572_s6 = inlined_call_operand.hbm [shape: f32[16,128], index: 6, kind: output, shape index: {}]  }
   0x1   :  { %13 = vsyncpa [#allocation7], 0 }
   0x2   :  { %14 = vsyncpa [#allocation5], 0  ;;  %s492_s21 = smov [#allocation6]   ;;  %s493_s23 = smov [#allocation3]  }
   0x3   :  { %s32_s22 = sshll.u32 %s492_s21, 4  ;;  %s20_s24 = sshll.u32 %s493_s23, 4  ;;  %s33_s22 = int_to_ptr.vmem [resolvable:$true] %s32_s22  ;;  %s21_s24 = int_to_ptr.vmem [resolvable:$true] %s20_s24 }
   0x4   :  { %s414_s25 = scalar_lea.vmem %s33_s22, 2048  ;;  %p419_p1 = scmp.lt.s32.totalorder %s33_s22, %s33_s22 }
   0x5   :  { %p415_p0 = scmp.ne.s32.totalorder %s33_s22, %s414_s25  ;;  %p420_p2 = scmp.lt.s32.totalorder %s414_s25, %s414_s25 }
   0x7   :  { %p421_p3 = por %p420_p2, %p419_p1 }
   0x9   :  { %p422_p4 = pnand %p421_p3, %p415_p0 }
   0xb   :  { %425 = shalt.err (!%p422_p4)
}
   0xc   :  { %s494_s26 = smov 128   ;;  %s495_s27 = smov 8  }
   0xd   :  { %38 = dma.hbm_to_vmem [thread:$0]  %s567_s1, 2048, %s33_s22, [#allocation7], %s494_s26, %s494_s26, %s495_s27  }
   0xe   :  { %s434_s30 = scalar_lea.vmem %s21_s24, 256  ;;  %p439_p6 = scmp.lt.s32.totalorder %s21_s24, %s21_s24 }
   0xf   :  { %p435_p5 = scmp.ne.s32.totalorder %s21_s24, %s434_s30  ;;  %p440_p7 = scmp.lt.s32.totalorder %s434_s30, %s434_s30 }
  0x11   :  { %p441_p8 = por %p440_p7, %p439_p6 }
  0x13   :  { %p442_p9 = pnand %p441_p8, %p435_p5 }
  0x15   :  { %445 = shalt.err (!%p442_p9)
}
  0x16   :  { %26 = dma.hbm_to_vmem [thread:$0]  %s566_s0, 256, %s21_s24, [#allocation4], %s494_s26, %s494_s26, %s495_s27  }
  0x17   :  { %s496_s9 = smov [#allocation8]  }
  0x18   :  { %s48_s10 = sshll.u32 %s496_s9, 4  ;;  %s49_s10 = int_to_ptr.vmem [resolvable:$true] %s48_s10 }
  0x19   :  { %s454_s11 = scalar_lea.vmem %s49_s10, 2048  ;;  %p459_p11 = scmp.lt.s32.totalorder %s49_s10, %s49_s10 }
  0x1a   :  { %p455_p10 = scmp.ne.s32.totalorder %s49_s10, %s454_s11  ;;  %p460_p12 = scmp.lt.s32.totalorder %s454_s11, %s454_s11 }
  0x1c   :  { %p461_p13 = por %p460_p12, %p459_p11 }
  0x1e   :  { %p462_p0 = pnand %p461_p13, %p455_p10 }
  0x20   :  { %465 = shalt.err (!%p462_p0)
}
  0x21   :  { %54 = dma.hbm_to_vmem [thread:$0]  %s570_s4, 2048, %s49_s10, [#allocation7], %s494_s26, %s494_s26, %s495_s27  }
  0x22   :  { %486 = dma.done.wait [#allocation4], 256  }
  0x23   :  { %487 = vsyncadd [#allocation4], 4294967040 }
  0x24   :  { %488 = dma.done.wait [#allocation7], 4096  }
  0x25   :  { %489 = vsyncadd [#allocation7], 4294963200  ;;  %v83_v0 = vld [vmem:[#allocation6 + $0x78] sm:$0xff]  ;;  %v82_v1 = vld [vmem:[#allocation6 + $0x70] sm:$0xff]  ;;  %v169_v37 = vstv %s569_s3 }
  0x26   :  { %330 = vmatprep.subr.mxu0 %v83_v0  ;;  %v81_v2 = vld [vmem:[#allocation6 + $0x68] sm:$0xff]  ;;  %v80_v3 = vld [vmem:[#allocation6 + $0x60] sm:$0xff]  ;;  %v66_v4 = vld [vmem:[#allocation3] sm:$0xff] }
  0x27   :  { %331 = vmatpush3.msra.mxu0 %v83_v0  ;;  %v79_v5 = vld [vmem:[#allocation6 + $0x58] sm:$0xff]  ;;  %362 = vmatprep.mubr.f32.mxu0 %v66_v4  ;;  %v188_v7 = vld [vmem:[#allocation8 + $0x70] sm:$0xff]  ;;  %v187_v9 = vld [vmem:[#allocation8 + $0x68] sm:$0xff] }
  0x28   :  { %332 = vmatprep.subr.mxu0 %v82_v1  ;;  %v189_v6 = vld [vmem:[#allocation8 + $0x78] sm:$0xff]  ;;  %v78_v8 = vld [vmem:[#allocation6 + $0x50] sm:$0xff]  ;;  %v77_v10 = vld [vmem:[#allocation6 + $0x48] sm:$0xff] }
  0x29   :  { %333 = vmatpush3.msra.mxu0 %v82_v1  ;;  %365 = vmatprep.subr.mxu1 %v189_v6  ;;  %v186_v11 = vld [vmem:[#allocation8 + $0x60] sm:$0xff]  ;;  %v185_v13 = vld [vmem:[#allocation8 + $0x58] sm:$0xff]  ;;  %v184_v15 = vld [vmem:[#allocation8 + $0x50] sm:$0xff] }
  0x2a   :  { %334 = vmatprep.subr.mxu0 %v81_v2  ;;  %366 = vmatpush3.msra.mxu1 %v189_v6  ;;  %v76_v12 = vld [vmem:[#allocation6 + $0x40] sm:$0xff]  ;;  %v75_v14 = vld [vmem:[#allocation6 + $0x38] sm:$0xff]  ;;  %v74_v16 = vld [vmem:[#allocation6 + $0x30] sm:$0xff] }
  0x2b   :  { %335 = vmatpush3.msra.mxu0 %v81_v2  ;;  %367 = vmatprep.subr.mxu1 %v188_v7  ;;  %v183_v17 = vld [vmem:[#allocation8 + $0x48] sm:$0xff]  ;;  %v182_v19 = vld [vmem:[#allocation8 + $0x40] sm:$0xff]  ;;  %v181_v21 = vld [vmem:[#allocation8 + $0x38] sm:$0xff] }
  0x2c   :  { %336 = vmatprep.subr.mxu0 %v80_v3  ;;  %368 = vmatpush3.msra.mxu1 %v188_v7  ;;  %v73_v18 = vld [vmem:[#allocation6 + $0x28] sm:$0xff]  ;;  %v72_v20 = vld [vmem:[#allocation6 + $0x20] sm:$0xff]  ;;  %v71_v22 = vld [vmem:[#allocation6 + $0x18] sm:$0xff] }
  0x2d   :  { %337 = vmatpush3.msra.mxu0 %v80_v3  ;;  %369 = vmatprep.subr.mxu1 %v187_v9  ;;  %v180_v23 = vld [vmem:[#allocation8 + $0x30] sm:$0xff]  ;;  %v179_v25 = vld [vmem:[#allocation8 + $0x28] sm:$0xff]  ;;  %v178_v27 = vld [vmem:[#allocation8 + $0x20] sm:$0xff] }
  0x2e   :  { %338 = vmatprep.subr.mxu0 %v79_v5  ;;  %370 = vmatpush3.msra.mxu1 %v187_v9  ;;  %v70_v24 = vld [vmem:[#allocation6 + $0x10] sm:$0xff]  ;;  %v69_v26 = vld [vmem:[#allocation6 + $0x8] sm:$0xff]  ;;  %v68_v28 = vld [vmem:[#allocation6] sm:$0xff] }
  0x2f   :  { %339 = vmatpush3.msra.mxu0 %v79_v5  ;;  %371 = vmatprep.subr.mxu1 %v186_v11  ;;  %v67_v29 = vld [vmem:[#allocation3 + $0x8] sm:$0xff]  ;;  %v176_v31 = vld [vmem:[#allocation8 + $0x10] sm:$0xff]  ;;  %v175_v32 = vld [vmem:[#allocation8 + $0x8] sm:$0xff] }
  0x30   :  { %340 = vmatprep.subr.mxu0 %v78_v8  ;;  %372 = vmatpush3.msra.mxu1 %v186_v11  ;;  %v177_v30 = vld [vmem:[#allocation8 + $0x18] sm:$0xff]  ;;  %v174_v33 = vld [vmem:[#allocation8] sm:$0xff]  ;;  %v292_v34 = vld [vmem:[%s568_s2] ss:$0 sm:$0xff]  ;;  %s497_s2 = smov [#allocation9]  }
  0x31   :  { %341 = vmatpush3.msra.mxu0 %v78_v8  ;;  %373 = vmatprep.subr.mxu1 %v185_v13  ;;  %v293_v44 = vld [vmem:[%s571_s5] ss:$0 sm:$0xff]  ;;  %s279_s17 = sshll.u32 %s497_s2, 4  ;;  %s280_s17 = int_to_ptr.vmem [resolvable:$true] %s279_s17 }
  0x32   :  { %342 = vmatprep.subr.mxu0 %v77_v10  ;;  %374 = vmatpush3.msra.mxu1 %v185_v13  ;;  %s466_s3 = scalar_lea.vmem %s280_s17, 256  ;;  %p471_p2 = scmp.lt.s32.totalorder %s280_s17, %s280_s17 }
  0x33   :  { %343 = vmatpush3.msra.mxu0 %v77_v10  ;;  %375 = vmatprep.subr.mxu1 %v184_v15  ;;  %p467_p1 = scmp.ne.s32.totalorder %s280_s17, %s466_s3  ;;  %p472_p3 = scmp.lt.s32.totalorder %s466_s3, %s466_s3 }
  0x34   :  { %344 = vmatprep.subr.mxu0 %v76_v12  ;;  %376 = vmatpush3.msra.mxu1 %v184_v15 }
  0x35   :  { %345 = vmatpush3.msra.mxu0 %v76_v12  ;;  %377 = vmatprep.subr.mxu1 %v183_v17  ;;  %p473_p4 = por %p472_p3, %p471_p2 }
  0x36   :  { %346 = vmatprep.subr.mxu0 %v75_v14  ;;  %378 = vmatpush3.msra.mxu1 %v183_v17 }
  0x37   :  { %347 = vmatpush3.msra.mxu0 %v75_v14  ;;  %379 = vmatprep.subr.mxu1 %v182_v19  ;;  %p474_p5 = pnand %p473_p4, %p467_p1 }
  0x38   :  { %348 = vmatprep.subr.mxu0 %v74_v16  ;;  %380 = vmatpush3.msra.mxu1 %v182_v19 }
  0x39   :  { %349 = vmatpush3.msra.mxu0 %v74_v16  ;;  %381 = vmatprep.subr.mxu1 %v181_v21 }
  0x3a   :  { %350 = vmatprep.subr.mxu0 %v73_v18  ;;  %382 = vmatpush3.msra.mxu1 %v181_v21 }
  0x3b   :  { %351 = vmatpush3.msra.mxu0 %v73_v18  ;;  %383 = vmatprep.subr.mxu1 %v180_v23 }
  0x3c   :  { %352 = vmatprep.subr.mxu0 %v72_v20  ;;  %384 = vmatpush3.msra.mxu1 %v180_v23 }
  0x3d   :  { %353 = vmatpush3.msra.mxu0 %v72_v20  ;;  %385 = vmatprep.subr.mxu1 %v179_v25 }
  0x3e   :  { %354 = vmatprep.subr.mxu0 %v71_v22  ;;  %386 = vmatpush3.msra.mxu1 %v179_v25 }
  0x3f   :  { %355 = vmatpush3.msra.mxu0 %v71_v22  ;;  %387 = vmatprep.subr.mxu1 %v178_v27 }
  0x40   :  { %356 = vmatprep.subr.mxu0 %v70_v24  ;;  %388 = vmatpush3.msra.mxu1 %v178_v27 }
  0x41   :  { %357 = vmatpush3.msra.mxu0 %v70_v24  ;;  %389 = vmatprep.subr.mxu1 %v177_v30 }
  0x42   :  { %358 = vmatprep.subr.mxu0 %v69_v26  ;;  %390 = vmatpush3.msra.mxu1 %v177_v30 }
  0x43   :  { %359 = vmatpush3.msra.mxu0 %v69_v26  ;;  %391 = vmatprep.subr.mxu1 %v176_v31 }
  0x44   :  { %360 = vmatprep.subr.mxu0 %v68_v28  ;;  %392 = vmatpush3.msra.mxu1 %v176_v31 }
  0x45   :  { %361 = vmatpush3.msra.mxu0 %v68_v28  ;;  %393 = vmatprep.subr.mxu1 %v175_v32 }
  0x46   :  { %363 = vmatmul.mubr.f32.vlgmr.msra.gmra.mxu0 %v67_v29  ;;  %394 = vmatpush3.msra.mxu1 %v175_v32 }
  0x47   :  { %395 = vmatprep.subr.mxu1 %v174_v33 }
  0x48   :  { %396 = vmatpush3.msra.mxu1 %v174_v33 }
 0x106   :  { %v364_v35 = vpop.f32.mrf.mxu0 }
 0x107   :  { %v163_v36 = vadd.f32 %v364_v35, %v292_v34 }
 0x108   :  { %v157_v38 = vpop.f32.mrf.mxu0 }
 0x109   :  { %v158_v39 = vadd.f32 %v292_v34, %v157_v38  ;;  %v171_v40 = vmul.f32 %v169_v37, %v163_v36  ;;  %vm168_vm1 = vcmp.gt.f32.partialorder %v163_v36, 0.0 }
 0x10b   :  { %vm167_vm0 = vcmp.gt.f32.partialorder %v158_v39, 0.0  ;;  %v170_v41 = vmul.f32 %v169_v37, %v158_v39  ;;  %v173_v43 = vsel %vm168_vm1, %v163_v36, %v171_v40 }
 0x10d   :  { %v172_v42 = vsel %vm167_vm0, %v158_v39, %v170_v41 }
 0x10e   :  { %397 = vmatprep.mubr.f32.mxu1 %v172_v42 }
 0x10f   :  { %398 = vmatmul.mubr.f32.vlgmr.msra.gmra.mxu1 %v173_v43 }
 0x1cf   :  { %v399_v45 = vpop.f32.mrf.mxu1 }
 0x1d0   :  { %v269_v46 = vadd.f32 %v399_v45, %v293_v44 }
 0x1d1   :  { %v263_v47 = vpop.f32.mrf.mxu1 }
 0x1d2   :  { %273 = vst [vmem:[#allocation9 + $0x8] sm:$0xff] %v269_v46  ;;  %v264_v48 = vadd.f32 %v293_v44, %v263_v47 }
 0x1d4   :  { %272 = vst [vmem:[#allocation9] sm:$0xff] %v264_v48 }
 0x1d5   :  { %477 = shalt.err (!%p474_p5)
}
 0x1d6   :  { %285 = dma.vmem_to_hbm [thread:$0]  %s280_s17, 256, %s572_s6, [#allocation5], %s494_s26, %s494_s26, %s495_s27  }
 0x1d7   :  { %490 = dma.done.wait [#allocation5], 256  }
 0x1d8   :  { %491 = vsyncadd [#allocation5], 4294967040 }
 0x1d9   :  { %289 = vsyncpa [#allocation4], 1 }
 0x1da   :  { %290 = vsyncpa [#allocation7], 1 }
 0x1db   :  { %291 = vsyncpa [#allocation5], 1 }

</bundles_post_ra>
